<compile_context>
chip_gen: v6e
topology: v6e:2x2x1
jax: 0.10.0
libtpu: 0.0.40
codegen_flags: <defaults>
</compile_context>

<pallas_src>
import jax
import jax.numpy as jnp
from jax.experimental import pallas as pl
from jax.experimental.pallas import tpu as pltpu

HIDDEN = 64  # fixed by the module (conv1/2/3 all produce 64 channels)


def spefcn_kernel(x_ref, w1_ref, b1_ref, w2_ref, b2_ref, w3_ref, b3_ref,
                  wc_cat_ref, bc_ref, o_ref, hcat_ref):
    # x_ref: (1, C_in, TP) f32 tile — channels x pixel-tile; weights (bf16) and
    # biases (f32) fully resident in VMEM. hcat_ref: (3*HIDDEN, TP) bf16 scratch.
    x = x_ref[0].astype(jnp.bfloat16)                                   # (C_in, TP)

    h1 = jnp.dot(w1_ref[...], x, preferred_element_type=jnp.float32) + b1_ref[...]
    h1 = jnp.maximum(h1, 0.0)                                            # (64, TP) f32
    h1_bf = h1.astype(jnp.bfloat16)
    hcat_ref[0:HIDDEN, :] = h1_bf

    h2 = jnp.dot(w2_ref[...], h1_bf, preferred_element_type=jnp.float32) + b2_ref[...]
    h2 = jnp.maximum(h2, 0.0)
    h2_bf = h2.astype(jnp.bfloat16)
    hcat_ref[HIDDEN:2 * HIDDEN, :] = h2_bf

    h3 = jnp.dot(w3_ref[...], h2_bf, preferred_element_type=jnp.float32) + b3_ref[...]
    h3 = jnp.maximum(h3, 0.0)
    hcat_ref[2 * HIDDEN:3 * HIDDEN, :] = h3.astype(jnp.bfloat16)

    # Single K=192 contraction replaces (h1+h2+h3) followed by a K=64 matmul.
    y = jnp.dot(wc_cat_ref[...], hcat_ref[...],
                preferred_element_type=jnp.float32) + bc_ref[...]
    o_ref[0] = y.astype(o_ref.dtype)                                     # (n_cls, TP)


def _pick_pixel_tile(hw, batch, cap=4096, min_grid_steps=2):
    """Lane-dense pixel tile: a multiple of 128, at most `cap`, no divisibility
    requirement (the grid uses cdiv and Pallas pads/masks the tail block).
    Ensures batch * num_pixel_tiles >= min_grid_steps so both v7x TensorCores
    get work (harmless on the single-core v5e/v6e)."""
    tile = min(cap, max(128, ((hw + 127) // 128) * 128))
    while batch * pl.cdiv(hw, tile) < min_grid_steps and tile > 128:
        half = tile // 2
        tile = max(128, ((half + 127) // 128) * 128)
    return tile


def spefcn_forward(x_nchw, params, *, tile_p=None):
    """x_nchw: (B, C_in, H, W) float32. Returns (B, num_classes, H, W) float32."""
    w1, b1, w2, b2, w3, b3, wc, bc = params
    B, C_in, H, W = x_nchw.shape
    n_cls = wc.shape[0]
    HW = H * W

    if tile_p is None:
        tile_p = _pick_pixel_tile(HW, B)

    # NCHW -> (B, C_in, H*W): pure reshape, no transpose / extra HBM traffic.
    x_rows = x_nchw.reshape(B, C_in, HW)

    # bf16 weights for the MXU; biases stay f32 (added to the f32 accumulators).
    w1_bf = w1.astype(jnp.bfloat16)
    w2_bf = w2.astype(jnp.bfloat16)
    w3_bf = w3.astype(jnp.bfloat16)
    wc_cat = jnp.concatenate([wc, wc, wc], axis=1).astype(jnp.bfloat16)  # (n_cls, 192)

    grid = (B, pl.cdiv(HW, tile_p))

    def full(b, p):  # whole-array block for resident parameters
        return (0, 0)

    # Advisory cost hint for the XLA scheduler.
    flops = 2 * B * HW * (C_in * HIDDEN + 2 * HIDDEN * HIDDEN + 3 * HIDDEN * n_cls)
    param_bytes = (w1_bf.size + w2_bf.size + w3_bf.size + wc_cat.size) * 2 + \
                  (b1.size + b2.size + b3.size + bc.size) * 4
    bytes_accessed = B * HW * (C_in * 4 + n_cls * 4) + param_bytes
    cost = pl.CostEstimate(flops=flops, transcendentals=0,
                           bytes_accessed=bytes_accessed)

    out_rows = pl.pallas_call(
        spefcn_kernel,
        out_shape=jax.ShapeDtypeStruct((B, n_cls, HW), jnp.float32),
        grid_spec=pltpu.PrefetchScalarGridSpec(
            num_scalar_prefetch=0,
            grid=grid,
            in_specs=[
                pl.BlockSpec((1, C_in, tile_p), lambda b, p: (b, 0, p)),  # x tile
                pl.BlockSpec((HIDDEN, C_in), full),                       # W1 (out,in) bf16
                pl.BlockSpec((HIDDEN, 1), full),                          # b1 f32
                pl.BlockSpec((HIDDEN, HIDDEN), full),                     # W2 bf16
                pl.BlockSpec((HIDDEN, 1), full),                          # b2 f32
                pl.BlockSpec((HIDDEN, HIDDEN), full),                     # W3 bf16
                pl.BlockSpec((HIDDEN, 1), full),                          # b3 f32
                pl.BlockSpec((n_cls, 3 * HIDDEN), full),                  # Wc_cat bf16
                pl.BlockSpec((n_cls, 1), full),                           # bc f32
            ],
            out_specs=pl.BlockSpec((1, n_cls, tile_p), lambda b, p: (b, 0, p)),
            scratch_shapes=[pltpu.VMEM((3 * HIDDEN, tile_p), jnp.bfloat16)],
        ),
        compiler_params=pltpu.CompilerParams(
            dimension_semantics=("parallel", "parallel"),
            vmem_limit_bytes=32 << 20),
        cost_estimate=cost,
    )(x_rows, w1_bf, b1, w2_bf, b2, w3_bf, b3, wc_cat, bc)

    # (B, n_cls, H*W) -> (B, n_cls, H, W): free reshape, no transpose.
    return out_rows.reshape(B, n_cls, H, W)


def init_params(key, num_features, num_classes):
    """Deterministic synthetic parameters (conv layout: (out, in); bias (out, 1))."""
    ks = jax.random.split(key, 8)

    def lin(k, fan_in, fan_out):
        scale = 1.0 / jnp.sqrt(jnp.float32(fan_in))
        return jax.random.uniform(k, (fan_out, fan_in), jnp.float32, -scale, scale)

    w1 = lin(ks[0], num_features, HIDDEN)
    b1 = jax.random.uniform(ks[1], (HIDDEN, 1), jnp.float32, -0.1, 0.1)
    w2 = lin(ks[2], HIDDEN, HIDDEN)
    b2 = jax.random.uniform(ks[3], (HIDDEN, 1), jnp.float32, -0.1, 0.1)
    w3 = lin(ks[4], HIDDEN, HIDDEN)
    b3 = jax.random.uniform(ks[5], (HIDDEN, 1), jnp.float32, -0.1, 0.1)
    wc = lin(ks[6], HIDDEN, num_classes)
    bc = jax.random.uniform(ks[7], (num_classes, 1), jnp.float32, -0.1, 0.1)
    return (w1, b1, w2, b2, w3, b3, wc, bc)


def spefcn_reference(x_nchw, params):
    """Pure-JAX f32 reference (same math as the PyTorch forward)."""
    w1, b1, w2, b2, w3, b3, wc, bc = params
    B, C, H, W = x_nchw.shape
    x = x_nchw.reshape(B, C, H * W)
    h1 = jnp.maximum(jnp.einsum('oc,bcp->bop', w1, x) + b1[None], 0.0)
    h2 = jnp.maximum(jnp.einsum('oc,bcp->bop', w2, h1) + b2[None], 0.0)
    h3 = jnp.maximum(jnp.einsum('oc,bcp->bop', w3, h2) + b3[None], 0.0)
    y = jnp.einsum('oc,bcp->bop', wc, h1 + h2 + h3) + bc[None]
    return y.reshape(B, -1, H, W)


if __name__ == "__main__":
    num_features = 16   # small, consistent with Conv2d(num_features, 64, k=1)
    num_classes = 9
    B, H, W = 2, 16, 16  # H*W = 256 pixels per image -> one lane-dense tile each

    key = jax.random.PRNGKey(0)
    kx, kp = jax.random.split(key)
    x = jax.random.normal(kx, (B, num_features, H, W), jnp.float32)
    params = init_params(kp, num_features, num_classes)

    out = spefcn_forward(x, params)
    out = jax.block_until_ready(out)

    ref = spefcn_reference(x, params)
    assert out.shape == (B, num_classes, H, W)
    # bf16 MXU operands (f32 accumulation) => relaxed tolerance vs the f32 reference.
    assert jnp.allclose(out, ref, atol=5e-2, rtol=5e-2)

    print("KERNEL_OK")
</pallas_src>

<mosaic_0001>
module attributes {stable_mosaic.version = 11 : i64} {
  func.func @spefcn_kernel(%arg0: i32, %arg1: i32, %arg2: memref<1x16x256xf32, #tpu.memory_space<vmem>>, %arg3: memref<64x16xbf16, #tpu.memory_space<vmem>>, %arg4: memref<64x1xf32, #tpu.memory_space<vmem>>, %arg5: memref<64x64xbf16, #tpu.memory_space<vmem>>, %arg6: memref<64x1xf32, #tpu.memory_space<vmem>>, %arg7: memref<64x64xbf16, #tpu.memory_space<vmem>>, %arg8: memref<64x1xf32, #tpu.memory_space<vmem>>, %arg9: memref<9x192xbf16, #tpu.memory_space<vmem>>, %arg10: memref<9x1xf32, #tpu.memory_space<vmem>>, %arg11: memref<1x9x256xf32, #tpu.memory_space<vmem>>, %arg12: memref<192x256xbf16, #tpu.memory_space<vmem>>) attributes {dimension_semantics = [#tpu.dimension_semantics<parallel>, #tpu.dimension_semantics<parallel>], iteration_bounds = array<i64: 2, 1>, scalar_prefetch = 0 : i64, scratch_operands = 1 : i64, tpu.core_type = #tpu.core_type<tc>, window_params = [{transform_indices = @transform_0, window_bounds = array<i64: 1, 16, 256>}, {pipeline_mode = #tpu.pipeline_mode<synchronous>, transform_indices = @transform_1, window_bounds = array<i64: 64, 16>}, {pipeline_mode = #tpu.pipeline_mode<synchronous>, transform_indices = @transform_2, window_bounds = array<i64: 64, 1>}, {pipeline_mode = #tpu.pipeline_mode<synchronous>, transform_indices = @transform_3, window_bounds = array<i64: 64, 64>}, {pipeline_mode = #tpu.pipeline_mode<synchronous>, transform_indices = @transform_4, window_bounds = array<i64: 64, 1>}, {pipeline_mode = #tpu.pipeline_mode<synchronous>, transform_indices = @transform_5, window_bounds = array<i64: 64, 64>}, {pipeline_mode = #tpu.pipeline_mode<synchronous>, transform_indices = @transform_6, window_bounds = array<i64: 64, 1>}, {pipeline_mode = #tpu.pipeline_mode<synchronous>, transform_indices = @transform_7, window_bounds = array<i64: 9, 192>}, {pipeline_mode = #tpu.pipeline_mode<synchronous>, transform_indices = @transform_8, window_bounds = array<i64: 9, 1>}, {transform_indices = @transform_9, window_bounds = array<i64: 1, 9, 256>}]} {
    %c0 = arith.constant 0 : index
    %c0_0 = arith.constant 0 : index
    %c0_1 = arith.constant 0 : index
    %0 = vector.load %arg2[%c0, %c0_0, %c0_1] : memref<1x16x256xf32, #tpu.memory_space<vmem>>, vector<1x16x256xf32>
    %1 = vector.shape_cast %0 : vector<1x16x256xf32> to vector<16x256xf32>
    %2 = arith.truncf %1 : vector<16x256xf32> to vector<16x256xbf16>
    %c0_2 = arith.constant 0 : index
    %c0_3 = arith.constant 0 : index
    %3 = vector.load %arg3[%c0_2, %c0_3] : memref<64x16xbf16, #tpu.memory_space<vmem>>, vector<64x16xbf16>
    %cst = arith.constant dense<0.000000e+00> : vector<64x256xf32>
    %4 = tpu.matmul %3, %2, %cst {dimension_numbers = #tpu.dot_dimension_numbers<[1], [0], [0], [1], [0, 0, 1, 1], [], []>} : vector<64x16xbf16>, vector<16x256xbf16>, vector<64x256xf32> -> vector<64x256xf32>
    %c0_4 = arith.constant 0 : index
    %c0_5 = arith.constant 0 : index
    %5 = vector.load %arg4[%c0_4, %c0_5] : memref<64x1xf32, #tpu.memory_space<vmem>>, vector<64x1xf32>
    %6 = vector.broadcast %5 : vector<64x1xf32> to vector<64x256xf32>
    %7 = arith.addf %4, %6 : vector<64x256xf32>
    %cst_6 = arith.constant 0.000000e+00 : f32
    %8 = vector.broadcast %cst_6 : f32 to vector<64x256xf32>
    %9 = arith.maximumf %7, %8 : vector<64x256xf32>
    %10 = arith.truncf %9 : vector<64x256xf32> to vector<64x256xbf16>
    %c0_7 = arith.constant 0 : index
    %c0_8 = arith.constant 0 : index
    %11 = vector.load %arg12[%c0_7, %c0_8] : memref<192x256xbf16, #tpu.memory_space<vmem>>, vector<64x256xbf16>
    tpu.vector_store %arg12[%c0_7, %c0_8], %10 {strides = array<i32>} : memref<192x256xbf16, #tpu.memory_space<vmem>>, vector<64x256xbf16>,
    %c0_9 = arith.constant 0 : index
    %c0_10 = arith.constant 0 : index
    %12 = vector.load %arg5[%c0_9, %c0_10] : memref<64x64xbf16, #tpu.memory_space<vmem>>, vector<64x64xbf16>
    %cst_11 = arith.constant dense<0.000000e+00> : vector<64x256xf32>
    %13 = tpu.matmul %12, %10, %cst_11 {dimension_numbers = #tpu.dot_dimension_numbers<[1], [0], [0], [1], [0, 0, 1, 1], [], []>} : vector<64x64xbf16>, vector<64x256xbf16>, vector<64x256xf32> -> vector<64x256xf32>
    %c0_12 = arith.constant 0 : index
    %c0_13 = arith.constant 0 : index
    %14 = vector.load %arg6[%c0_12, %c0_13] : memref<64x1xf32, #tpu.memory_space<vmem>>, vector<64x1xf32>
    %15 = vector.broadcast %14 : vector<64x1xf32> to vector<64x256xf32>
    %16 = arith.addf %13, %15 : vector<64x256xf32>
    %cst_14 = arith.constant 0.000000e+00 : f32
    %17 = vector.broadcast %cst_14 : f32 to vector<64x256xf32>
    %18 = arith.maximumf %16, %17 : vector<64x256xf32>
    %19 = arith.truncf %18 : vector<64x256xf32> to vector<64x256xbf16>
    %c64 = arith.constant 64 : index
    %c0_15 = arith.constant 0 : index
    %20 = vector.load %arg12[%c64, %c0_15] : memref<192x256xbf16, #tpu.memory_space<vmem>>, vector<64x256xbf16>
    tpu.vector_store %arg12[%c64, %c0_15], %19 {strides = array<i32>} : memref<192x256xbf16, #tpu.memory_space<vmem>>, vector<64x256xbf16>,
    %c0_16 = arith.constant 0 : index
    %c0_17 = arith.constant 0 : index
    %21 = vector.load %arg7[%c0_16, %c0_17] : memref<64x64xbf16, #tpu.memory_space<vmem>>, vector<64x64xbf16>
    %cst_18 = arith.constant dense<0.000000e+00> : vector<64x256xf32>
    %22 = tpu.matmul %21, %19, %cst_18 {dimension_numbers = #tpu.dot_dimension_numbers<[1], [0], [0], [1], [0, 0, 1, 1], [], []>} : vector<64x64xbf16>, vector<64x256xbf16>, vector<64x256xf32> -> vector<64x256xf32>
    %c0_19 = arith.constant 0 : index
    %c0_20 = arith.constant 0 : index
    %23 = vector.load %arg8[%c0_19, %c0_20] : memref<64x1xf32, #tpu.memory_space<vmem>>, vector<64x1xf32>
    %24 = vector.broadcast %23 : vector<64x1xf32> to vector<64x256xf32>
    %25 = arith.addf %22, %24 : vector<64x256xf32>
    %cst_21 = arith.constant 0.000000e+00 : f32
    %26 = vector.broadcast %cst_21 : f32 to vector<64x256xf32>
    %27 = arith.maximumf %25, %26 : vector<64x256xf32>
    %28 = arith.truncf %27 : vector<64x256xf32> to vector<64x256xbf16>
    %c128 = arith.constant 128 : index
    %c0_22 = arith.constant 0 : index
    %29 = vector.load %arg12[%c128, %c0_22] : memref<192x256xbf16, #tpu.memory_space<vmem>>, vector<64x256xbf16>
    tpu.vector_store %arg12[%c128, %c0_22], %28 {strides = array<i32>} : memref<192x256xbf16, #tpu.memory_space<vmem>>, vector<64x256xbf16>,
    %c0_23 = arith.constant 0 : index
    %c0_24 = arith.constant 0 : index
    %30 = vector.load %arg9[%c0_23, %c0_24] : memref<9x192xbf16, #tpu.memory_space<vmem>>, vector<9x192xbf16>
    %c0_25 = arith.constant 0 : index
    %c0_26 = arith.constant 0 : index
    %31 = vector.load %arg12[%c0_25, %c0_26] : memref<192x256xbf16, #tpu.memory_space<vmem>>, vector<192x256xbf16>
    %cst_27 = arith.constant dense<0.000000e+00> : vector<9x256xf32>
    %32 = tpu.matmul %30, %31, %cst_27 {dimension_numbers = #tpu.dot_dimension_numbers<[1], [0], [0], [1], [0, 0, 1, 1], [], []>} : vector<9x192xbf16>, vector<192x256xbf16>, vector<9x256xf32> -> vector<9x256xf32>
    %c0_28 = arith.constant 0 : index
    %c0_29 = arith.constant 0 : index
    %33 = vector.load %arg10[%c0_28, %c0_29] : memref<9x1xf32, #tpu.memory_space<vmem>>, vector<9x1xf32>
    %34 = vector.broadcast %33 : vector<9x1xf32> to vector<9x256xf32>
    %35 = arith.addf %32, %34 : vector<9x256xf32>
    %c0_30 = arith.constant 0 : index
    %c0_31 = arith.constant 0 : index
    %c0_32 = arith.constant 0 : index
    %36 = vector.load %arg11[%c0_30, %c0_31, %c0_32] : memref<1x9x256xf32, #tpu.memory_space<vmem>>, vector<1x9x256xf32>
    %37 = vector.shape_cast %36 : vector<1x9x256xf32> to vector<9x256xf32>
    %38 = vector.shape_cast %35 : vector<9x256xf32> to vector<1x9x256xf32>
    tpu.vector_store %arg11[%c0_30, %c0_31, %c0_32], %38 {strides = array<i32>} : memref<1x9x256xf32, #tpu.memory_space<vmem>>, vector<1x9x256xf32>,
    return
  }
  func.func @transform_0(%arg0: i32, %arg1: i32) -> (i32, i32, i32) {
    %c0_i32 = arith.constant 0 : i32
    %c0_i32_0 = arith.constant 0 : i32
    return %arg0, %c0_i32, %arg1 : i32, i32, i32
  }
  func.func @transform_1(%arg0: i32, %arg1: i32) -> (i32, i32) {
    %c0_i32 = arith.constant 0 : i32
    %c0_i32_0 = arith.constant 0 : i32
    %c0_i32_1 = arith.constant 0 : i32
    return %c0_i32, %c0_i32_0 : i32, i32
  }
  func.func @transform_2(%arg0: i32, %arg1: i32) -> (i32, i32) {
    %c0_i32 = arith.constant 0 : i32
    %c0_i32_0 = arith.constant 0 : i32
    %c0_i32_1 = arith.constant 0 : i32
    return %c0_i32, %c0_i32_0 : i32, i32
  }
  func.func @transform_3(%arg0: i32, %arg1: i32) -> (i32, i32) {
    %c0_i32 = arith.constant 0 : i32
    %c0_i32_0 = arith.constant 0 : i32
    %c0_i32_1 = arith.constant 0 : i32
    return %c0_i32, %c0_i32_0 : i32, i32
  }
  func.func @transform_4(%arg0: i32, %arg1: i32) -> (i32, i32) {
    %c0_i32 = arith.constant 0 : i32
    %c0_i32_0 = arith.constant 0 : i32
    %c0_i32_1 = arith.constant 0 : i32
    return %c0_i32, %c0_i32_0 : i32, i32
  }
  func.func @transform_5(%arg0: i32, %arg1: i32) -> (i32, i32) {
    %c0_i32 = arith.constant 0 : i32
    %c0_i32_0 = arith.constant 0 : i32
    %c0_i32_1 = arith.constant 0 : i32
    return %c0_i32, %c0_i32_0 : i32, i32
  }
  func.func @transform_6(%arg0: i32, %arg1: i32) -> (i32, i32) {
    %c0_i32 = arith.constant 0 : i32
    %c0_i32_0 = arith.constant 0 : i32
    %c0_i32_1 = arith.constant 0 : i32
    return %c0_i32, %c0_i32_0 : i32, i32
  }
  func.func @transform_7(%arg0: i32, %arg1: i32) -> (i32, i32) {
    %c0_i32 = arith.constant 0 : i32
    %c0_i32_0 = arith.constant 0 : i32
    %c0_i32_1 = arith.constant 0 : i32
    return %c0_i32, %c0_i32_0 : i32, i32
  }
  func.func @transform_8(%arg0: i32, %arg1: i32) -> (i32, i32) {
    %c0_i32 = arith.constant 0 : i32
    %c0_i32_0 = arith.constant 0 : i32
    %c0_i32_1 = arith.constant 0 : i32
    return %c0_i32, %c0_i32_0 : i32, i32
  }
  func.func @transform_9(%arg0: i32, %arg1: i32) -> (i32, i32, i32) {
    %c0_i32 = arith.constant 0 : i32
    %c0_i32_0 = arith.constant 0 : i32
    return %arg0, %c0_i32, %arg1 : i32, i32, i32
  }
}

</mosaic_0001>

<bundles_post_ra>
// kernel: tpu_custom_call.1
= control target key start
LH: loop header
LB: loop body
LE: loop exit
PB: predicated region body
PF: predicated region fallthrough
CT: control target
= control target key end

     0   :  { %s1637_s30 = smov 0   ;;  %s1639_s10 = smov 0   ;;  %s1856_s0 = inlined_call_operand.vmem [shape: f32[2,16,256], index: 0, kind: input, shape index: {}]   ;;  %s1857_s1 = inlined_call_operand.vmem [shape: bf16[64,16], index: 1, kind: input, shape index: {}]   ;;  %s1858_s2 = inlined_call_operand.vmem [shape: f32[64,1], index: 2, kind: input, shape index: {}]   ;;  %s1859_s3 = inlined_call_operand.vmem [shape: bf16[64,64], index: 3, kind: input, shape index: {}]   ;;  %s1860_s4 = inlined_call_operand.vmem [shape: f32[64,1], index: 4, kind: input, shape index: {}]   ;;  %s1861_s5 = inlined_call_operand.vmem [shape: bf16[64,64], index: 5, kind: input, shape index: {}]   ;;  %s1862_s6 = inlined_call_operand.vmem [shape: f32[64,1], index: 6, kind: input, shape index: {}]   ;;  %s1863_s7 = inlined_call_operand.vmem [shape: bf16[9,192], index: 7, kind: input, shape index: {}]   ;;  %s1864_s8 = inlined_call_operand.vmem [shape: f32[9,1], index: 8, kind: input, shape index: {}]   ;;  %s1865_s9 = inlined_call_operand.vmem [shape: f32[2,9,256], index: 9, kind: output, shape index: {}]  }
   0x1   :  { %s1641_s11 = smov 0  }
   0x2 LB: > { %s31_s12 = sadd.s32 1, %s1580_s10  ;;  %p1388_p0 = scmp.ge.s32.totalorder %s1584_s11, 1  ;;  %s1584_s11 = sphi %s1641_s11, %s19_s11   ;;  %s1580_s10 = sphi %s1639_s10, %s1867_s10   ;;  %s1576_s30 = sphi %s1637_s30, %s1866_s30  }
   0x3   : > { %p33_p1 = scmp.ge.s32.totalorder %s31_s12, 2  ;;  %p308_p2 = scmp.lt.s32.totalorder %s1584_s11, 3 }
   0x5   : > { %s1869_s12 = smov (%p33_p1, %s31_s12), 0  ;;  %p309_p3 = pnand %p1388_p0, %p308_p2 }
   0x6   : > { %p353_p4 = scmp.lt.s32.totalorder (!%p309_p3), %s1576_s30, 1 }
   0x7   : > { %312 = sbr.rel (%p309_p3) target bundleno = 959 (0x3bf), region = 56 }
   0xc   : > { %v1586_v0 = vmov 0   ;;  %s1871_s30 = smov (!%p353_p4, %s1576_s30), 1  ;;  %v393_v1 = vld [vmem:[%s1858_s2 + $0x30] sm:$0xff]  ;;  %v394_v2 = vld [vmem:[%s1858_s2 + $0x38] sm:$0xff]  ;;  %v391_v3 = vld [vmem:[%s1858_s2 + $0x20] sm:$0xff]  ;;  %vm455_vm0 = vcmask 130048  }
   0xd   : > { %500 = vmatprep.mubr.bf16.mxu0 %v1586_v0  ;;  %1545 = vset.pattern.permute.xlu0 %v1586_v0  ;;  %s1470_s13 = sshll.u32 %s1871_s30, 5  ;;  %v392_v9 = vld [vmem:[%s1858_s2 + $0x28] sm:$0xff]  ;;  %v1547_v11 = vld [vmem:[%s1857_s1] sm:$0xff]   ;;  %v389_v12 = vld [vmem:[%s1858_s2 + $0x10] sm:$0xff]  ;;  %vm689_vm1 = vcmask 523264  }
   0xe   : > { %1546 = vset.pattern.permute.xlu1 %v1586_v0  ;;  %734 = vmatprep.mubr.bf16.mxu1 %v1586_v0  ;;  %s360_s18 = scalar_lea.vmem %s1856_s0, %s1470_s13  ;;  %v390_v13 = vld [vmem:[%s1858_s2 + $0x18] sm:$0xff]  ;;  %v387_v14 = vld [vmem:[%s1858_s2] sm:$0xff]  ;;  %v388_v15 = vld [vmem:[%s1858_s2 + $0x8] sm:$0xff]  ;;  %s370_s19 = scalar_lea.vmem %s1865_s9, %s1470_s13 }
   0xf   : > { %427 = vperm.xlu0 %1545, %v393_v1   ;;  %v374_v4 = vld [vmem:[%s360_s18 + $0x8] sm:$0xff]  ;;  %v376_v5 = vld [vmem:[%s360_s18 + $0x18] sm:$0xff]  ;;  %v373_v6 = vld [vmem:[%s360_s18] sm:$0xff]  ;;  %417 = vperm.xlu1 %1546, %v391_v3  }
  0x10   : > { %v378_v7 = vpack.c.bf16 %v376_v5, %v374_v4  ;;  %v375_v8 = vld [vmem:[%s360_s18 + $0x10] sm:$0xff]  ;;  %v1548_v16 = vld [vmem:[%s1857_s1 + $0x8] sm:$0xff]   ;;  %v628_v18 = vld [vmem:[%s1860_s4 + $0x38] sm:$0xff] }
  0x11   : > { %v377_v10 = vpack.c.bf16 %v375_v8, %v373_v6  ;;  %v627_v17 = vld [vmem:[%s1860_s4 + $0x30] sm:$0xff]  ;;  %v625_v19 = vld [vmem:[%s1860_s4 + $0x20] sm:$0xff]  ;;  %v626_v20 = vld [vmem:[%s1860_s4 + $0x28] sm:$0xff] }
  0x12   : > { %482 = vmatprep.subr.bf16.mxu0 %v378_v7  ;;  %v1549_v21 = vld [vmem:[%s1857_s1 + $0x10] sm:$0xff]   ;;  %v624_v23 = vld [vmem:[%s1860_s4 + $0x18] sm:$0xff]  ;;  %v621_v24 = vld [vmem:[%s1860_s4] sm:$0xff] }
  0x13   : > { %432 = vperm.xlu0 %1545, %v394_v2   ;;  %483 = vmatpush1.bf16.msra.mxu0 %v377_v10  ;;  %v623_v22 = vld [vmem:[%s1860_s4 + $0x10] sm:$0xff]  ;;  %v622_v25 = vld [vmem:[%s1860_s4 + $0x8] sm:$0xff]  ;;  %v1550_v26 = vld [vmem:[%s1857_s1 + $0x18] sm:$0xff]  }
  0x14   : > { %422 = vperm.xlu1 %1546, %v392_v9   ;;  %v861_v27 = vld [vmem:[%s1862_s6 + $0x30] sm:$0xff]  ;;  %v862_v28 = vld [vmem:[%s1862_s6 + $0x38] sm:$0xff]  ;;  %v859_v29 = vld [vmem:[%s1862_s6 + $0x20] sm:$0xff] }
  0x15   : > { %v860_v30 = vld [vmem:[%s1862_s6 + $0x28] sm:$0xff]  ;;  %v857_v31 = vld [vmem:[%s1862_s6 + $0x10] sm:$0xff]  ;;  %v858_v32 = vld [vmem:[%s1862_s6 + $0x18] sm:$0xff] }
  0x16   : > { %1397 = vmatmul.mubr.msk.bf16.vlgmr.msra.gmra.mxu0 %vm455_vm0, %v1547_v11  ;;  %v855_v33 = vld [vmem:[%s1862_s6] sm:$0xff]  ;;  %v856_v34 = vld [vmem:[%s1862_s6 + $0x8] sm:$0xff] }
  0x17   : > { %407 = vperm.xlu0 %1545, %v389_v12   ;;  %510 = vmatprep.mubr.bf16.mxu0 %v1586_v0  ;;  %v1106_v35 = vld [vmem:[%s1864_s8] sm:$0xff]  ;;  %v1107_v36 = vld [vmem:[%s1864_s8 + $0x8] sm:$0x1] }
  0x18   : > { %412 = vperm.xlu1 %1546, %v390_v13  }
  0x1b   : > { %397 = vperm.xlu0 %1545, %v387_v14  }
  0x1c   : > { %402 = vperm.xlu1 %1546, %v388_v15  }
  0x1e   : > { %1398 = vmatmul.mubr.msk.bf16.gmra.mxu0 %vm455_vm0, %v1548_v16 }
  0x1f   : > { %661 = vperm.xlu0 %1545, %v627_v17   ;;  %520 = vmatprep.mubr.bf16.mxu0 %v1586_v0 }
  0x20   : > { %666 = vperm.xlu1 %1546, %v628_v18  }
  0x23   : > { %651 = vperm.xlu0 %1545, %v625_v19  }
  0x24   : > { %656 = vperm.xlu1 %1546, %v626_v20  }
  0x26   : > { %1399 = vmatmul.mubr.msk.bf16.gmra.mxu0 %vm455_vm0, %v1549_v21 }
  0x27   : > { %641 = vperm.xlu0 %1545, %v623_v22   ;;  %530 = vmatprep.mubr.bf16.mxu0 %v1586_v0 }
  0x28   : > { %646 = vperm.xlu1 %1546, %v624_v23  }
  0x2b   : > { %631 = vperm.xlu0 %1545, %v621_v24  }
  0x2c   : > { %636 = vperm.xlu1 %1546, %v622_v25  }
  0x2e   : > { %1400 = vmatmul.mubr.msk.bf16.gmra.mxu0 %vm455_vm0, %v1550_v26 }
  0x2f   : > { %895 = vperm.xlu0 %1545, %v861_v27   ;;  %967 = vmatprep.mubr.bf16.mxu0 %v1586_v0 }
  0x30   : > { %900 = vperm.xlu1 %1546, %v862_v28  }
  0x33   : > { %885 = vperm.xlu0 %1545, %v859_v29  }
  0x34   : > { %890 = vperm.xlu1 %1546, %v860_v30  }
  0x37   : > { %875 = vperm.xlu0 %1545, %v857_v31  }
  0x38   : > { %880 = vperm.xlu1 %1546, %v858_v32  }
  0x3b   : > { %865 = vperm.xlu0 %1545, %v855_v33  }
  0x3c   : > { %870 = vperm.xlu1 %1546, %v856_v34  }
  0x3f   : > { %1110 = vperm.xlu0 %1545, %v1106_v35  }
  0x40   : > { %1115 = vperm.xlu1 %1546, %v1107_v36  }
  0x8a   : > { %v418_v46 = vpop.permute.xlu1 %417  ;;  %v428_v48 = vpop.permute.xlu0 %427 }
  0x8e   : > { %v433_v53 = vpop.permute.xlu0 %432 }
  0x8f   : > { %v423_v51 = vpop.permute.xlu1 %422 }
  0x92   : > { %v408_v1 = vpop.permute.xlu0 %407 }
  0x93   : > { %v413_v59 = vpop.permute.xlu1 %412 }
  0x96   : > { %v398_v20 = vpop.permute.xlu0 %397 }
  0x97   : > { %v403_v13 = vpop.permute.xlu1 %402 }
  0xd6   : > { %v502_v37 = vpop.f32.mrf.mxu0 }
  0xd7   : > { %v503_v30 = vadd.f32 %v502_v37, %v398_v20  ;;  %v1551_v37 = vld [vmem:[%s1859_s3] sm:$0xff]  }
  0xd8   : > { %v504_v38 = vpop.f32.mrf.mxu0 }
  0xd9   : > { %v505_v23 = vadd.f32 %v504_v38, %v398_v20  ;;  %v541_v36 = vmax.f32 %v503_v30, 0.0 }
  0xda   : > { %v506_v39 = vpop.f32.mrf.mxu0 }
  0xdb   : > { %v507_v25 = vadd.f32 %v506_v39, %v403_v13  ;;  %v542_v32 = vmax.f32 %v505_v23, 0.0  ;;  %v1552_v39 = vld [vmem:[%s1859_s3 + $0x8] sm:$0xff]  }
  0xdc   : > { %v508_v40 = vpop.f32.mrf.mxu0 }
  0xdd   : > { %v509_v17 = vadd.f32 %v508_v40, %v403_v13  ;;  %v543_v33 = vmax.f32 %v507_v25, 0.0  ;;  %v1553_v40 = vld [vmem:[%s1859_s3 + $0x10] sm:$0xff]  }
  0xde   : > { %v512_v41 = vpop.f32.mrf.mxu0 }
  0xdf   : > { %v513_v21 = vadd.f32 %v512_v41, %v408_v1  ;;  %v544_v28 = vmax.f32 %v509_v17, 0.0  ;;  %v1786_v38 = vpack.c.bf16 %v543_v33, %v541_v36  ;;  %v1554_v41 = vld [vmem:[%s1859_s3 + $0x18] sm:$0xff]  }
  0xe0   : > { %v514_v42 = vpop.f32.mrf.mxu0 }
  0xe1   : > { %v515_v10 = vadd.f32 %v514_v42, %v408_v1  ;;  %v545_v31 = vmax.f32 %v513_v21, 0.0  ;;  %v1782_v35 = vpack.c.bf16 %v544_v28, %v542_v32 }
  0xe2   : > { %v516_v43 = vpop.f32.mrf.mxu0 }
  0xe3   : > { %v517_v14 = vadd.f32 %v516_v43, %v413_v59  ;;  %v546_v24 = vmax.f32 %v515_v10, 0.0 }
  0xe4   : > { %v518_v44 = vpop.f32.mrf.mxu0 }
  0xe5   : > { %v519_v4 = vadd.f32 %v518_v44, %v413_v59  ;;  %v547_v26 = vmax.f32 %v517_v14, 0.0 }
  0xe6   : > { %v522_v45 = vpop.f32.mrf.mxu0 }
  0xe7   : > { %v523_v8 = vadd.f32 %v522_v45, %v418_v46  ;;  %v548_v18 = vmax.f32 %v519_v4, 0.0  ;;  %v1780_v34 = vpack.c.bf16 %v547_v26, %v545_v31 }
  0xe8   : > { %v524_v47 = vpop.f32.mrf.mxu0 }
  0xe9   : > { %v525_v62 = vadd.f32 %v524_v47, %v418_v46  ;;  %v549_v22 = vmax.f32 %v523_v8, 0.0  ;;  %v1776_v29 = vpack.c.bf16 %v548_v18, %v546_v24 }
  0xea   : > { %v526_v49 = vpop.f32.mrf.mxu0 }
  0xeb   : > { %v527_v2 = vadd.f32 %v526_v49, %v423_v51  ;;  %v550_v11 = vmax.f32 %v525_v62, 0.0 }
  0xec   : > { %v528_v50 = vpop.f32.mrf.mxu0 }
  0xed   : > { %v529_v56 = vadd.f32 %v528_v50, %v423_v51  ;;  %v551_v15 = vmax.f32 %v527_v2, 0.0  ;;  %v667_v51 = vpop.permute.xlu1 %666 }
  0xee   : > { %v532_v52 = vpop.f32.mrf.mxu0 }
  0xef   : > { %v533_v60 = vadd.f32 %v532_v52, %v428_v48  ;;  %v552_v5 = vmax.f32 %v529_v56, 0.0  ;;  %v1774_v27 = vpack.c.bf16 %v551_v15, %v549_v22 }
  0xf0   : > { %v534_v54 = vpop.f32.mrf.mxu0 }
  0xf1   : > { %v535_v57 = vadd.f32 %v534_v54, %v428_v48  ;;  %v553_v9 = vmax.f32 %v533_v60, 0.0  ;;  %v1769_v19 = vpack.c.bf16 %v552_v5, %v550_v11  ;;  %v657_v56 = vpop.permute.xlu1 %656 }
  0xf2   : > { %v536_v55 = vpop.f32.mrf.mxu0 }
  0xf3   : > { %v537_v58 = vadd.f32 %v536_v55, %v433_v53  ;;  %v554_v6 = vmax.f32 %v535_v57, 0.0 }
  0xf4   : > { %v538_v61 = vpop.f32.mrf.mxu0 }
  0xf5   : > { %v539_v63 = vadd.f32 %v538_v61, %v433_v53  ;;  %v555_v3 = vmax.f32 %v537_v58, 0.0  ;;  %v662_v53 = vpop.permute.xlu0 %661  ;;  %v647_v1 = vpop.permute.xlu1 %646 }
  0xf7   : > { %v556_v7 = vmax.f32 %v539_v63, 0.0  ;;  %v1767_v16 = vpack.c.bf16 %v555_v3, %v553_v9 }
  0xf9   : > { %v1765_v12 = vpack.c.bf16 %v556_v7, %v554_v6  ;;  %v652_v58 = vpop.permute.xlu0 %651  ;;  %v637_v21 = vpop.permute.xlu1 %636 }
  0xfb   : > { %710 = vmatprep.subr.bf16.mxu1 %v1765_v12 }
  0xfc   : > { %711 = vmatpush1.bf16.msra.mxu1 %v1767_v16 }
  0xfd   : > { %712 = vmatprep.subr.bf16.mxu1 %v1769_v19  ;;  %v642_v6 = vpop.permute.xlu0 %641 }
 0x100   : > { %713 = vmatpush1.bf16.msra.mxu1 %v1774_v27 }
 0x101   : > { %714 = vmatprep.subr.bf16.mxu1 %v1776_v29  ;;  %v632_v30 = vpop.permute.xlu0 %631 }
 0x104   : > { %715 = vmatpush1.bf16.msra.mxu1 %v1780_v34 }
 0x105   : > { %716 = vmatprep.subr.bf16.mxu1 %v1782_v35 }
 0x108   : > { %717 = vmatpush1.bf16.msra.mxu1 %v1786_v38 }
 0x10b   : > { %1413 = vmatmul.mubr.msk.bf16.vlgmr.msra.gmra.mxu1 %vm689_vm1, %v1551_v37 }
 0x10c   : > { %744 = vmatprep.mubr.bf16.mxu1 %v1586_v0 }
 0x113   : > { %1414 = vmatmul.mubr.msk.bf16.gmra.mxu1 %vm689_vm1, %v1552_v39 }
 0x114   : > { %754 = vmatprep.mubr.bf16.mxu1 %v1586_v0 }
 0x11b   : > { %1415 = vmatmul.mubr.msk.bf16.gmra.mxu1 %vm689_vm1, %v1553_v40 }
 0x11c   : > { %764 = vmatprep.mubr.bf16.mxu1 %v1586_v0 }
 0x123   : > { %1416 = vmatmul.mubr.msk.bf16.gmra.mxu1 %vm689_vm1, %v1554_v41 }
 0x1cb   : > { %v736_v42 = vpop.f32.mrf.mxu1 }
 0x1cd   : > { %v738_v43 = vpop.f32.mrf.mxu1 }
 0x1ce   : > { %v739_v33 = vadd.f32 %v738_v43, %v632_v30 }
 0x1cf   : > { %v740_v44 = vpop.f32.mrf.mxu1 }
 0x1d0   : > { %v741_v37 = vadd.f32 %v740_v44, %v637_v21  ;;  %v1555_v44 = vld [vmem:[%s1861_s5] sm:$0xff]  }
 0x1d1   : > { %v742_v45 = vpop.f32.mrf.mxu1 }
 0x1d2   : > { %v743_v25 = vadd.f32 %v742_v45, %v637_v21 }
 0x1d3   : > { %v746_v46 = vpop.f32.mrf.mxu1 }
 0x1d4   : > { %v747_v31 = vadd.f32 %v746_v46, %v642_v6  ;;  %v778_v41 = vmax.f32 %v743_v25, 0.0  ;;  %v777_v46 = vmax.f32 %v741_v37, 0.0 }
 0x1d5   : > { %v748_v47 = vpop.f32.mrf.mxu1 }
 0x1d6   : > { %v749_v17 = vadd.f32 %v748_v47, %v642_v6  ;;  %v779_v45 = vmax.f32 %v747_v31, 0.0 }
 0x1d7   : > { %v750_v48 = vpop.f32.mrf.mxu1 }
 0x1d8   : > { %v751_v22 = vadd.f32 %v750_v48, %v647_v1  ;;  %v780_v36 = vmax.f32 %v749_v17, 0.0  ;;  %v737_v48 = vadd.f32 %v736_v42, %v632_v30  ;;  %v1556_v42 = vld [vmem:[%s1861_s5 + $0x8] sm:$0xff]  }
 0x1d9   : > { %v752_v49 = vpop.f32.mrf.mxu1 }
 0x1da   : > { %v753_v9 = vadd.f32 %v752_v49, %v647_v1  ;;  %v781_v39 = vmax.f32 %v751_v22, 0.0  ;;  %v776_v49 = vmax.f32 %v739_v33, 0.0 }
 0x1db   : > { %v756_v50 = vpop.f32.mrf.mxu1 }
 0x1dc   : > { %v757_v14 = vadd.f32 %v756_v50, %v652_v58  ;;  %v782_v26 = vmax.f32 %v753_v9, 0.0  ;;  %v793_v50 = vpack.c.bf16 %v781_v39, %v779_v45 }
 0x1dd   : > { %v758_v52 = vpop.f32.mrf.mxu1 }
 0x1de   : > { %v759_v4 = vadd.f32 %v758_v52, %v652_v58  ;;  %v783_v32 = vmax.f32 %v757_v14, 0.0  ;;  %v794_v47 = vpack.c.bf16 %v782_v26, %v780_v36  ;;  %v775_v52 = vmax.f32 %v737_v48, 0.0  ;;  %v896_v58 = vpop.permute.xlu0 %895 }
 0x1df   : > { %v760_v54 = vpop.f32.mrf.mxu1 }
 0x1e0   : > { %v761_v7 = vadd.f32 %v760_v54, %v657_v56  ;;  %v784_v18 = vmax.f32 %v759_v4, 0.0  ;;  %v791_v43 = vpack.c.bf16 %v777_v46, %v775_v52 }
 0x1e1   : > { %v762_v55 = vpop.f32.mrf.mxu1 }
 0x1e2   : > { %v763_v61 = vadd.f32 %v762_v55, %v657_v56  ;;  %v785_v23 = vmax.f32 %v761_v7, 0.0  ;;  %v901_v56 = vpop.permute.xlu1 %900 }
 0x1e3   : > { %v766_v57 = vpop.f32.mrf.mxu1 }
 0x1e4   : > { %v767_v2 = vadd.f32 %v766_v57, %v662_v53  ;;  %v786_v10 = vmax.f32 %v763_v61, 0.0  ;;  %v795_v40 = vpack.c.bf16 %v785_v23, %v783_v32 }
 0x1e5   : > { %v768_v59 = vpop.f32.mrf.mxu1 }
 0x1e6   : > { %v769_v62 = vadd.f32 %v768_v59, %v662_v53  ;;  %v787_v15 = vmax.f32 %v767_v2, 0.0  ;;  %v796_v28 = vpack.c.bf16 %v786_v10, %v784_v18  ;;  %v891_v61 = vpop.permute.xlu1 %890 }
 0x1e7   : > { %v770_v60 = vpop.f32.mrf.mxu1 }
 0x1e8   : > { %v771_v63 = vadd.f32 %v770_v60, %v667_v51  ;;  %v788_v11 = vmax.f32 %v769_v62, 0.0 }
 0x1e9   : > { %v772_v3 = vpop.f32.mrf.mxu1 }
 0x1ea   : > { %v773_v5 = vadd.f32 %v772_v3, %v667_v51  ;;  %v789_v8 = vmax.f32 %v771_v63, 0.0  ;;  %v792_v51 = vpack.c.bf16 %v778_v41, %v776_v49  ;;  %v886_v63 = vpop.permute.xlu0 %885  ;;  %v881_v6 = vpop.permute.xlu1 %880 }
 0x1ec   : > { %v790_v13 = vmax.f32 %v773_v5, 0.0  ;;  %v797_v24 = vpack.c.bf16 %v789_v8, %v787_v15 }
 0x1ee   : > { %v798_v20 = vpack.c.bf16 %v790_v13, %v788_v11  ;;  %v876_v11 = vpop.permute.xlu0 %875  ;;  %v871_v26 = vpop.permute.xlu1 %870 }
 0x1f0   : > { %943 = vmatprep.subr.bf16.mxu0 %v798_v20  ;;  %1250 = vmatprep.subr.bf16.mxu1 %v798_v20 }
 0x1f1   : > { %944 = vmatpush1.bf16.msra.mxu0 %v797_v24  ;;  %1251 = vmatpush1.bf16.msra.mxu1 %v797_v24 }
 0x1f2   : > { %945 = vmatprep.subr.bf16.mxu0 %v796_v28  ;;  %1252 = vmatprep.subr.bf16.mxu1 %v796_v28  ;;  %v866_v37 = vpop.permute.xlu0 %865 }
 0x1f5   : > { %946 = vmatpush1.bf16.msra.mxu0 %v795_v40  ;;  %1253 = vmatpush1.bf16.msra.mxu1 %v795_v40 }
 0x1f6   : > { %947 = vmatprep.subr.bf16.mxu0 %v794_v47  ;;  %1254 = vmatprep.subr.bf16.mxu1 %v794_v47 }
 0x1f9   : > { %948 = vmatpush1.bf16.msra.mxu0 %v793_v50  ;;  %1255 = vmatpush1.bf16.msra.mxu1 %v793_v50 }
 0x1fa   : > { %949 = vmatprep.subr.bf16.mxu0 %v792_v51  ;;  %1256 = vmatprep.subr.bf16.mxu1 %v792_v51 }
 0x1fd   : > { %950 = vmatpush1.bf16.msra.mxu0 %v791_v43  ;;  %1257 = vmatpush1.bf16.msra.mxu1 %v791_v43 }
 0x1fe   : > { %1258 = vmatprep.subr.bf16.mxu1 %v1765_v12  ;;  %v1557_v12 = vld [vmem:[%s1861_s5 + $0x10] sm:$0xff]  }
 0x200   : > { %1429 = vmatmul.mubr.msk.bf16.vlgmr.msra.gmra.mxu0 %vm689_vm1, %v1555_v44 }
 0x201   : > { %1259 = vmatpush1.bf16.msra.mxu1 %v1767_v16  ;;  %977 = vmatprep.mubr.bf16.mxu0 %v1586_v0  ;;  %v1558_v16 = vld [vmem:[%s1861_s5 + $0x18] sm:$0xff]  }
 0x202   : > { %1260 = vmatprep.subr.bf16.mxu1 %v1769_v19  ;;  %v1561_v19 = vld [vmem:[%s1863_s7 + $0x4] ss:$8 sps:$4 sm:$0x1f]  }
 0x203   : > { %1467 = vmatprep.mubr.msk.bf16.mxu1 %vm689_vm1, %v1561_v19 }
 0x205   : > { %1261 = vmatpush1.bf16.msra.mxu1 %v1774_v27 }
 0x206   : > { %1262 = vmatprep.subr.bf16.mxu1 %v1776_v29 }
 0x208   : > { %1430 = vmatmul.mubr.msk.bf16.gmra.mxu0 %vm689_vm1, %v1556_v42 }
 0x209   : > { %1263 = vmatpush1.bf16.msra.mxu1 %v1780_v34  ;;  %987 = vmatprep.mubr.bf16.mxu0 %v1586_v0 }
 0x20a   : > { %1264 = vmatprep.subr.bf16.mxu1 %v1782_v35 }
 0x20d   : > { %1265 = vmatpush1.bf16.msra.mxu1 %v1786_v38 }
 0x210   : > { %1431 = vmatmul.mubr.msk.bf16.gmra.mxu0 %vm689_vm1, %v1557_v12 }
 0x211   : > { %997 = vmatprep.mubr.bf16.mxu0 %v1586_v0 }
 0x218   : > { %1432 = vmatmul.mubr.msk.bf16.gmra.mxu0 %vm689_vm1, %v1558_v16 }
 0x2c0   : > { %v969_v27 = vpop.f32.mrf.mxu0 }
 0x2c1   : > { %v970_v51 = vadd.f32 %v969_v27, %v866_v37 }
 0x2c2   : > { %v971_v29 = vpop.f32.mrf.mxu0 }
 0x2c3   : > { %v972_v41 = vadd.f32 %v971_v29, %v866_v37  ;;  %v1008_v16 = vmax.f32 %v970_v51, 0.0  ;;  %v1559_v29 = vld [vmem:[%s1863_s7] ss:$8 sps:$4 sm:$0x1f]  }
 0x2c4   : > { %v973_v34 = vpop.f32.mrf.mxu0 }
 0x2c5   : > { %v974_v48 = vadd.f32 %v973_v34, %v871_v26  ;;  %v1009_v43 = vmax.f32 %v972_v41, 0.0  ;;  %v1111_v34 = vpop.permute.xlu0 %1110 }
 0x2c6   : > { %v975_v35 = vpop.f32.mrf.mxu0 }
 0x2c7   : > { %v976_v32 = vadd.f32 %v975_v35, %v871_v26  ;;  %v1010_v44 = vmax.f32 %v974_v48, 0.0 }
 0x2c8   : > { %v979_v38 = vpop.f32.mrf.mxu0 }
 0x2c9   : > { %v980_v39 = vadd.f32 %v979_v38, %v876_v11  ;;  %v1011_v46 = vmax.f32 %v976_v32, 0.0  ;;  %v1512_v19 = vpack.c.bf16 %v1010_v44, %v1008_v16 }
 0x2ca   : > { %v981_v53 = vpop.f32.mrf.mxu0 }
 0x2cb   : > { %v982_v23 = vadd.f32 %v981_v53, %v876_v11  ;;  %v1012_v52 = vmax.f32 %v980_v39, 0.0  ;;  %v1513_v12 = vpack.c.bf16 %v1011_v46, %v1009_v43 }
 0x2cc   : > { %v983_v54 = vpop.f32.mrf.mxu0 }
 0x2cd   : > { %v984_v28 = vadd.f32 %v983_v54, %v881_v6  ;;  %v1013_v47 = vmax.f32 %v982_v23, 0.0  ;;  %v1116_v54 = vpop.permute.xlu1 %1115 }
 0x2ce   : > { %v985_v0 = vpop.f32.mrf.mxu0 }
 0x2cf   : > { %v986_v15 = vadd.f32 %v985_v0, %v881_v6  ;;  %v1014_v45 = vmax.f32 %v984_v28, 0.0 }
 0x2d0   : > { %v989_v55 = vpop.f32.mrf.mxu0 }
 0x2d1   : > { %v990_v21 = vadd.f32 %v989_v55, %v886_v63  ;;  %v1015_v33 = vmax.f32 %v986_v15, 0.0  ;;  %v1514_v42 = vpack.c.bf16 %v1014_v45, %v1012_v52 }
 0x2d2   : > { %v991_v57 = vpop.f32.mrf.mxu0 }
 0x2d3   : > { %v992_v9 = vadd.f32 %v991_v57, %v886_v63  ;;  %v1016_v40 = vmax.f32 %v990_v21, 0.0  ;;  %v1515_v50 = vpack.c.bf16 %v1015_v33, %v1013_v47 }
 0x2d4   : > { %v993_v59 = vpop.f32.mrf.mxu0 }
 0x2d5   : > { %v994_v13 = vadd.f32 %v993_v59, %v891_v61  ;;  %v1017_v24 = vmax.f32 %v992_v9, 0.0 }
 0x2d6   : > { %v995_v60 = vpop.f32.mrf.mxu0 }
 0x2d7   : > { %v996_v3 = vadd.f32 %v995_v60, %v891_v61  ;;  %v1018_v30 = vmax.f32 %v994_v13, 0.0 }
 0x2d8   : > { %v999_v62 = vpop.f32.mrf.mxu0 }
 0x2d9   : > { %v1000_v7 = vadd.f32 %v999_v62, %v896_v58  ;;  %v1019_v17 = vmax.f32 %v996_v3, 0.0  ;;  %v1516_v49 = vpack.c.bf16 %v1018_v30, %v1016_v40 }
 0x2da   : > { %v1001_v1 = vpop.f32.mrf.mxu0 }
 0x2db   : > { %v1002_v4 = vadd.f32 %v1001_v1, %v896_v58  ;;  %v1020_v22 = vmax.f32 %v1000_v7, 0.0  ;;  %v1517_v36 = vpack.c.bf16 %v1019_v17, %v1017_v24 }
 0x2dc   : > { %v1003_v2 = vpop.f32.mrf.mxu0 }
 0x2dd   : > { %v1004_v5 = vadd.f32 %v1003_v2, %v901_v56  ;;  %v1021_v18 = vmax.f32 %v1002_v4, 0.0 }
 0x2de   : > { %v1005_v8 = vpop.f32.mrf.mxu0 }
 0x2df   : > { %v1006_v10 = vadd.f32 %v1005_v8, %v901_v56  ;;  %v1022_v14 = vmax.f32 %v1004_v5, 0.0 }
 0x2e1   : > { %v1023_v20 = vmax.f32 %v1006_v10, 0.0  ;;  %v1518_v31 = vpack.c.bf16 %v1022_v14, %v1020_v22 }
 0x2e3   : > { %v1519_v25 = vpack.c.bf16 %v1023_v20, %v1021_v18 }
 0x2e5   : > { %1274 = vmatprep.subr.bf16.mxu1 %v1519_v25 }
 0x2e6   : > { %1275 = vmatpush2.bf16.msra.mxu1 %v1518_v31 }
 0x2e7   : > { %1276 = vmatprep.subr.bf16.mxu1 %v1517_v36 }
 0x2ea   : > { %1277 = vmatpush2.bf16.msra.mxu1 %v1516_v49 }
 0x2eb   : > { %1278 = vmatprep.subr.bf16.mxu1 %v1515_v50 }
 0x2ee   : > { %1279 = vmatpush2.bf16.msra.mxu1 %v1514_v42 }
 0x2ef   : > { %1280 = vmatprep.subr.bf16.mxu1 %v1513_v12 }
 0x2f2   : > { %1281 = vmatpush2.bf16.msra.mxu1 %v1512_v19 }
 0x2f5   : > { %1283 = vmatmul.mubr.bf16.vlgmr.msra.gmra.mxu1 %v1559_v29 }
 0x3b5   : > { %v1284_v27 = vpop.f32.mrf.mxu1 }
 0x3b6   : > { %v1285_v35 = vadd.f32 %v1284_v27, %v1111_v34 }
 0x3b7   : > { %v1286_v38 = vpop.f32.mrf.mxu1 }
 0x3b8   : > { %1293 = vst [vmem:[%s370_s19] sm:$0xff] %v1285_v35  ;;  %v1287_v53 = vadd.f32 %v1286_v38, %v1111_v34 }
 0x3b9   : > { %v1288_v0 = vpop.f32.mrf.mxu1 }
 0x3ba   : > { %1294 = vst [vmem:[%s370_s19 + $0x8] sm:$0xff] %v1287_v53  ;;  %v1289_v55 = vadd.f32 %v1288_v0, %v1116_v54 }
 0x3bb   : > { %v1290_v56 = vpop.f32.mrf.mxu1 }
 0x3bc   : > { %1295 = vst [vmem:[%s370_s19 + $0x10] sm:$0x1] %v1289_v55  ;;  %v1291_v57 = vadd.f32 %v1290_v56, %v1116_v54 }
 0x3be   : > { %1296 = vst [vmem:[%s370_s19 + $0x18] sm:$0x1] %v1291_v57 }
 0x3bf PF: > { %s19_s11 = sadd.s32 1, %s1584_s11   ;;  %s1866_s30 = smov %s1580_s10 }
 0x3c0   : > { %p16_p5 = scmp.ge.s32.totalorder %s19_s11, 4   ;;  %s1867_s10 = smov %s1869_s12 }
 0x3c2   :  { %18 = sbr.rel (!%p16_p5) target bundleno = 2 (0x2), region = 86 }

</bundles_post_ra>
